<compile_context>
chip_gen: v7x
topology: tpu7x:2x2x1
jax: 0.10.0
libtpu: 0.0.40
codegen_flags: <defaults>
</compile_context>

<pallas_src>
import functools

import jax
import jax.numpy as jnp
from jax.experimental import pallas as pl
from jax.experimental.pallas import tpu as pltpu


def _round_up(a, b):
    return (a + b - 1) // b * b


def _full_basic_model_kernel(x_ref,            # VMEM [TM, F]   bf16 (row tile)
                             w1_ref, b1_ref,   # [F,  H1] bf16, [1, H1] f32
                             w2_ref, b2_ref,   # [H1, H2] bf16, [1, H2] f32
                             wo_ref, bo_ref,   # [H2, 1]  bf16, [1, 1]  f32
                             betas_ref,        # SMEM (2,) f32
                             po_ref):          # VMEM [TM, 2] f32 (predict | out)
    x = x_ref[...]                                                  # bf16 [TM, F]

    # Layer 1: w1 is zero-padded on its first 3 input rows, so this matmul
    # over the full x tile is exactly x[:, 3:] @ W1.
    h1 = jnp.maximum(
        jnp.dot(x, w1_ref[...], preferred_element_type=jnp.float32)
        + b1_ref[...], 0.0)                                          # f32 [TM, H1]
    h2 = jnp.maximum(
        jnp.dot(h1.astype(jnp.bfloat16), w2_ref[...],
                preferred_element_type=jnp.float32)
        + b2_ref[...], 0.0)                                          # f32 [TM, H2]
    o = (jnp.dot(h2.astype(jnp.bfloat16), wo_ref[...],
                 preferred_element_type=jnp.float32)
         + bo_ref[...])                                              # f32 [TM, 1]

    # Beta path on the VPU in f32 (v5e has no bf16 VPU).
    x1 = x[:, 1:2].astype(jnp.float32)
    x2 = x[:, 2:3].astype(jnp.float32)
    p = o + betas_ref[0] * x1 + betas_ref[1] * x2                    # f32 [TM, 1]

    po_ref[...] = jnp.concatenate([p, o], axis=-1)                   # [TM, 2]


@functools.partial(jax.jit, static_argnames=("tm",))
def full_basic_model(x, params, *, tm=1024):
    """x: [B, S, F] float32 -> (predict [B, S], out [B, S])."""
    B, S, F = x.shape
    M = B * S

    w1, b1 = params["w1"], params["b1"]   # [in, h1], [h1]  (pre-transposed vs torch)
    w2, b2 = params["w2"], params["b2"]   # [h1, h2], [h2]
    wo, bo = params["wo"], params["bo"]   # [h2, 1],  [1]
    H1, H2, OUT = w1.shape[1], w2.shape[1], wo.shape[1]
    assert w1.shape[0] == F - 3, "W1 must have in_size = F - 3 input rows"
    assert OUT == 1, "out_size must be 1 (module squeezes the last dim)"

    # Row tile: multiple of 8 sublanes, capped by M (rounded up).  Sweep
    # 512-2048 for large M.  VMEM footprint at tm=1024 is tiny (x tile
    # ~2*1024*F*2B double-buffered + [TM,2] output + resident weights), far
    # below the scoped limits on v5e/v6e and v7x's halved 64 MiB VMEM.
    TM = min(tm, _round_up(M, 8))
    M_pad = _round_up(M, TM)
    grid = (M_pad // TM,)

    # Single contiguous bf16 input slab; garbage rows past M are sliced off.
    x2d = x.reshape(M, F).astype(jnp.bfloat16)
    if M_pad != M:
        x2d = jnp.pad(x2d, ((0, M_pad - M), (0, 0)))

    # Fold the x[:, :, 3:] slice into W1 by zero-padding its first 3 rows.
    w1p = jnp.concatenate([jnp.zeros((3, H1), w1.dtype), w1],
                          axis=0).astype(jnp.bfloat16)               # [F, H1]
    w2b = w2.astype(jnp.bfloat16)                                    # [H1, H2]
    wob = wo.astype(jnp.bfloat16)                                    # [H2, 1]
    b1f = b1.reshape(1, H1).astype(jnp.float32)
    b2f = b2.reshape(1, H2).astype(jnp.float32)
    bof = bo.reshape(1, 1).astype(jnp.float32)
    betas = jnp.stack([params["beta1"], params["beta2"]]).astype(jnp.float32)  # (2,)

    tile = lambda i: (i, 0)      # row-tiled operands
    pinned = lambda i: (0, 0)    # VMEM-resident weights / biases

    flops = 2 * M_pad * (F * H1 + H1 * H2 + H2 * OUT) + 4 * M_pad
    bytes_accessed = (M_pad * F * 2                      # bf16 x stream
                      + M_pad * 2 * 4                    # packed f32 output
                      + (F * H1 + H1 * H2 + H2 * OUT) * 2
                      + (H1 + H2 + OUT + 2) * 4)

    po = pl.pallas_call(
        _full_basic_model_kernel,
        out_shape=jax.ShapeDtypeStruct((M_pad, 2), jnp.float32),
        grid=grid,
        in_specs=[
            pl.BlockSpec((TM, F), tile),
            pl.BlockSpec((F, H1), pinned), pl.BlockSpec((1, H1), pinned),
            pl.BlockSpec((H1, H2), pinned), pl.BlockSpec((1, H2), pinned),
            pl.BlockSpec((H2, OUT), pinned), pl.BlockSpec((1, OUT), pinned),
            pl.BlockSpec(memory_space=pltpu.SMEM),       # betas (2,) f32
        ],
        out_specs=pl.BlockSpec((TM, 2), tile),
        compiler_params=pltpu.CompilerParams(
            dimension_semantics=("parallel",)),          # 2-TC sharding on v7x
        cost_estimate=pl.CostEstimate(
            flops=flops, transcendentals=0, bytes_accessed=bytes_accessed),
    )(x2d, w1p, b1f, w2b, b2f, wob, bof, betas)

    predict = po[:M, 0].reshape(B, S)
    out = po[:M, 1].reshape(B, S)
    return predict, out


if __name__ == "__main__":
    # Small shapes consistent with the forward pass:
    # in_size = 32 (so F = 35), h1 = h2 = 32, out_size = 1 (required by squeeze).
    B, S = 2, 8
    in_size, h1_size, h2_size, out_size = 32, 32, 32, 1
    F = in_size + 3

    key = jax.random.PRNGKey(0)
    ks = jax.random.split(key, 7)
    x = jax.random.normal(ks[0], (B, S, F), jnp.float32)

    def init_linear(kw, kb, fan_in, fan_out):
        # PyTorch-Linear-style uniform(-1/sqrt(fan_in), 1/sqrt(fan_in)).
        bound = 1.0 / (fan_in ** 0.5)
        w = jax.random.uniform(kw, (fan_in, fan_out), jnp.float32, -bound, bound)
        b = jax.random.uniform(kb, (fan_out,), jnp.float32, -bound, bound)
        return w, b

    w1, b1 = init_linear(ks[1], ks[2], in_size, h1_size)
    w2, b2 = init_linear(ks[3], ks[4], h1_size, h2_size)
    wo, bo = init_linear(ks[5], ks[6], h2_size, out_size)

    params = dict(
        w1=w1, b1=b1, w2=w2, b2=b2, wo=wo, bo=bo,
        # nn.Parameter(torch.tensor(0.)) inits to 0; nonzero here to exercise
        # the beta path in the check.
        beta1=jnp.float32(0.3),
        beta2=jnp.float32(-0.7),
    )

    predict, out = full_basic_model(x, params)
    jax.block_until_ready((predict, out))

    # Pure-JAX reference using the same bf16 MXU-operand casts (f32 accumulate).
    bf = lambda v: v.astype(jnp.bfloat16).astype(jnp.float32)
    h1r = jax.nn.relu(bf(x[:, :, 3:]) @ bf(w1) + b1)
    h2r = jax.nn.relu(bf(h1r) @ bf(w2) + b2)
    o_ref = (bf(h2r) @ bf(wo) + bo)[..., 0]
    p_ref = o_ref + params["beta1"] * bf(x[:, :, 1]) + params["beta2"] * bf(x[:, :, 2])

    assert predict.shape == (B, S) and out.shape == (B, S)
    assert jnp.allclose(out, o_ref, atol=5e-3, rtol=5e-3), "out mismatch"
    assert jnp.allclose(predict, p_ref, atol=5e-3, rtol=5e-3), "predict mismatch"

    print("KERNEL_OK")
</pallas_src>

<mosaic_0001>
module attributes {stable_mosaic.version = 11 : i64} {
  func.func @_full_basic_model_kernel(%arg0: i32, %arg1: memref<16x35xbf16, #tpu.memory_space<vmem>>, %arg2: memref<35x32xbf16, #tpu.memory_space<vmem>>, %arg3: memref<1x32xf32, #tpu.memory_space<vmem>>, %arg4: memref<32x32xbf16, #tpu.memory_space<vmem>>, %arg5: memref<1x32xf32, #tpu.memory_space<vmem>>, %arg6: memref<32x1xbf16, #tpu.memory_space<vmem>>, %arg7: memref<1x1xf32, #tpu.memory_space<vmem>>, %arg8: memref<2xf32, #tpu.memory_space<smem>>, %arg9: memref<16x2xf32, #tpu.memory_space<vmem>>) attributes {dimension_semantics = [#tpu.dimension_semantics<parallel>], iteration_bounds = array<i64: 1>, scalar_prefetch = 0 : i64, scratch_operands = 0 : i64, tpu.core_type = #tpu.core_type<tc>, window_params = [{transform_indices = @transform_0, window_bounds = array<i64: 16, 35>}, {pipeline_mode = #tpu.pipeline_mode<synchronous>, transform_indices = @transform_1, window_bounds = array<i64: 35, 32>}, {pipeline_mode = #tpu.pipeline_mode<synchronous>, transform_indices = @transform_2, window_bounds = array<i64: 1, 32>}, {pipeline_mode = #tpu.pipeline_mode<synchronous>, transform_indices = @transform_3, window_bounds = array<i64: 32, 32>}, {pipeline_mode = #tpu.pipeline_mode<synchronous>, transform_indices = @transform_4, window_bounds = array<i64: 1, 32>}, {pipeline_mode = #tpu.pipeline_mode<synchronous>, transform_indices = @transform_5, window_bounds = array<i64: 32, 1>}, {pipeline_mode = #tpu.pipeline_mode<synchronous>, transform_indices = @transform_6, window_bounds = array<i64: 1, 1>}, {transform_indices = @transform_7, window_bounds = array<i64: 2>}, {transform_indices = @transform_8, window_bounds = array<i64: 16, 2>}]} {
    %c0 = arith.constant 0 : index
    %c0_0 = arith.constant 0 : index
    %0 = vector.load %arg1[%c0, %c0_0] : memref<16x35xbf16, #tpu.memory_space<vmem>>, vector<16x35xbf16>
    %c0_1 = arith.constant 0 : index
    %c0_2 = arith.constant 0 : index
    %1 = vector.load %arg2[%c0_1, %c0_2] : memref<35x32xbf16, #tpu.memory_space<vmem>>, vector<35x32xbf16>
    %cst = arith.constant dense<0.000000e+00> : vector<16x32xf32>
    %2 = tpu.matmul %0, %1, %cst {dimension_numbers = #tpu.dot_dimension_numbers<[1], [0], [0], [1], [0, 0, 1, 1], [], []>} : vector<16x35xbf16>, vector<35x32xbf16>, vector<16x32xf32> -> vector<16x32xf32>
    %c0_3 = arith.constant 0 : index
    %c0_4 = arith.constant 0 : index
    %3 = vector.load %arg3[%c0_3, %c0_4] : memref<1x32xf32, #tpu.memory_space<vmem>>, vector<1x32xf32>
    %4 = vector.broadcast %3 : vector<1x32xf32> to vector<16x32xf32>
    %5 = arith.addf %2, %4 : vector<16x32xf32>
    %cst_5 = arith.constant 0.000000e+00 : f32
    %6 = vector.broadcast %cst_5 : f32 to vector<16x32xf32>
    %7 = arith.maximumf %5, %6 : vector<16x32xf32>
    %8 = arith.truncf %7 : vector<16x32xf32> to vector<16x32xbf16>
    %c0_6 = arith.constant 0 : index
    %c0_7 = arith.constant 0 : index
    %9 = vector.load %arg4[%c0_6, %c0_7] : memref<32x32xbf16, #tpu.memory_space<vmem>>, vector<32x32xbf16>
    %cst_8 = arith.constant dense<0.000000e+00> : vector<16x32xf32>
    %10 = tpu.matmul %8, %9, %cst_8 {dimension_numbers = #tpu.dot_dimension_numbers<[1], [0], [0], [1], [0, 0, 1, 1], [], []>} : vector<16x32xbf16>, vector<32x32xbf16>, vector<16x32xf32> -> vector<16x32xf32>
    %c0_9 = arith.constant 0 : index
    %c0_10 = arith.constant 0 : index
    %11 = vector.load %arg5[%c0_9, %c0_10] : memref<1x32xf32, #tpu.memory_space<vmem>>, vector<1x32xf32>
    %12 = vector.broadcast %11 : vector<1x32xf32> to vector<16x32xf32>
    %13 = arith.addf %10, %12 : vector<16x32xf32>
    %cst_11 = arith.constant 0.000000e+00 : f32
    %14 = vector.broadcast %cst_11 : f32 to vector<16x32xf32>
    %15 = arith.maximumf %13, %14 : vector<16x32xf32>
    %16 = arith.truncf %15 : vector<16x32xf32> to vector<16x32xbf16>
    %c0_12 = arith.constant 0 : index
    %c0_13 = arith.constant 0 : index
    %17 = vector.load %arg6[%c0_12, %c0_13] : memref<32x1xbf16, #tpu.memory_space<vmem>>, vector<32x1xbf16>
    %cst_14 = arith.constant dense<0.000000e+00> : vector<16x1xf32>
    %18 = tpu.matmul %16, %17, %cst_14 {dimension_numbers = #tpu.dot_dimension_numbers<[1], [0], [0], [1], [0, 0, 1, 1], [], []>} : vector<16x32xbf16>, vector<32x1xbf16>, vector<16x1xf32> -> vector<16x1xf32>
    %c0_15 = arith.constant 0 : index
    %c0_16 = arith.constant 0 : index
    %19 = vector.load %arg7[%c0_15, %c0_16] : memref<1x1xf32, #tpu.memory_space<vmem>>, vector<1x1xf32>
    %20 = vector.broadcast %19 : vector<1x1xf32> to vector<16x1xf32>
    %21 = arith.addf %18, %20 : vector<16x1xf32>
    %22 = vector.extract_strided_slice %0 {offsets = [0, 1], sizes = [16, 1], strides = [1, 1]} : vector<16x35xbf16> to vector<16x1xbf16>
    %23 = arith.extf %22 : vector<16x1xbf16> to vector<16x1xf32>
    %24 = vector.extract_strided_slice %0 {offsets = [0, 2], sizes = [16, 1], strides = [1, 1]} : vector<16x35xbf16> to vector<16x1xbf16>
    %25 = arith.extf %24 : vector<16x1xbf16> to vector<16x1xf32>
    %c0_17 = arith.constant 0 : index
    %26 = memref.load %arg8[%c0_17] : memref<2xf32, #tpu.memory_space<smem>>
    %27 = vector.broadcast %26 : f32 to vector<16x1xf32>
    %28 = arith.mulf %27, %23 : vector<16x1xf32>
    %29 = arith.addf %21, %28 : vector<16x1xf32>
    %c1 = arith.constant 1 : index
    %30 = memref.load %arg8[%c1] : memref<2xf32, #tpu.memory_space<smem>>
    %31 = vector.broadcast %30 : f32 to vector<16x1xf32>
    %32 = arith.mulf %31, %25 : vector<16x1xf32>
    %33 = arith.addf %29, %32 : vector<16x1xf32>
    %34 = tpu.concatenate %33, %21 in 1 : vector<16x1xf32>, vector<16x1xf32> -> vector<16x2xf32>
    %c0_18 = arith.constant 0 : index
    %c0_19 = arith.constant 0 : index
    %35 = vector.load %arg9[%c0_18, %c0_19] : memref<16x2xf32, #tpu.memory_space<vmem>>, vector<16x2xf32>
    tpu.vector_store %arg9[%c0_18, %c0_19], %34 {strides = array<i32>} : memref<16x2xf32, #tpu.memory_space<vmem>>, vector<16x2xf32>,
    return
  }
  func.func @transform_0(%arg0: i32) -> (i32, i32) {
    %c0_i32 = arith.constant 0 : i32
    %c0_i32_0 = arith.constant 0 : i32
    return %arg0, %c0_i32 : i32, i32
  }
  func.func @transform_1(%arg0: i32) -> (i32, i32) {
    %c0_i32 = arith.constant 0 : i32
    %c0_i32_0 = arith.constant 0 : i32
    %c0_i32_1 = arith.constant 0 : i32
    return %c0_i32, %c0_i32_0 : i32, i32
  }
  func.func @transform_2(%arg0: i32) -> (i32, i32) {
    %c0_i32 = arith.constant 0 : i32
    %c0_i32_0 = arith.constant 0 : i32
    %c0_i32_1 = arith.constant 0 : i32
    return %c0_i32, %c0_i32_0 : i32, i32
  }
  func.func @transform_3(%arg0: i32) -> (i32, i32) {
    %c0_i32 = arith.constant 0 : i32
    %c0_i32_0 = arith.constant 0 : i32
    %c0_i32_1 = arith.constant 0 : i32
    return %c0_i32, %c0_i32_0 : i32, i32
  }
  func.func @transform_4(%arg0: i32) -> (i32, i32) {
    %c0_i32 = arith.constant 0 : i32
    %c0_i32_0 = arith.constant 0 : i32
    %c0_i32_1 = arith.constant 0 : i32
    return %c0_i32, %c0_i32_0 : i32, i32
  }
  func.func @transform_5(%arg0: i32) -> (i32, i32) {
    %c0_i32 = arith.constant 0 : i32
    %c0_i32_0 = arith.constant 0 : i32
    %c0_i32_1 = arith.constant 0 : i32
    return %c0_i32, %c0_i32_0 : i32, i32
  }
  func.func @transform_6(%arg0: i32) -> (i32, i32) {
    %c0_i32 = arith.constant 0 : i32
    %c0_i32_0 = arith.constant 0 : i32
    %c0_i32_1 = arith.constant 0 : i32
    return %c0_i32, %c0_i32_0 : i32, i32
  }
  func.func @transform_7(%arg0: i32) -> i32 {
    %c0_i32 = arith.constant 0 : i32
    %c0_i32_0 = arith.constant 0 : i32
    return %c0_i32 : i32
  }
  func.func @transform_8(%arg0: i32) -> (i32, i32) {
    %c0_i32 = arith.constant 0 : i32
    %c0_i32_0 = arith.constant 0 : i32
    return %arg0, %c0_i32 : i32, i32
  }
}

</mosaic_0001>

<bundles_post_ra>
// kernel: squeeze.3
= control target key start
LH: loop header
LB: loop body
LE: loop exit
PB: predicated region body
PF: predicated region fallthrough
CT: control target
= control target key end

     0   :  { %s85_s0 = inlined_call_operand.vmem [shape: f32[16], index: 0, kind: input, shape index: {}]   ;;  %s86_s1 = inlined_call_operand.hbm [shape: f32[2,8], index: 1, kind: output, shape index: {}]  }
   0x1   :  { %v5_v0 = vld [vmem:[%s85_s0] sm:$0x1] }
   0x2   :  { %2 = vsyncpa [#allocation1], 0  ;;  %6 = vst [vmem:[#allocation3] sm:$0x1] %v5_v0  ;;  %vm8_vm0 = vcmask 64512   ;;  %s58_s0 = smov 120  }
   0x3   :  { %s59_s8 = smov [#allocation0]  }
   0x4   :  { %s26_s9 = sshll.u32 %s59_s8, 4  ;;  %s27_s9 = int_to_ptr.vmem [resolvable:$true] %s26_s9 }
   0x5   :  { %s34_s10 = scalar_lea.vmem %s27_s9, 32  ;;  %p39_p1 = scmp.lt.s32.totalorder %s27_s9, %s27_s9 }
   0x6   :  { %p35_p0 = scmp.ne.s32.totalorder %s27_s9, %s34_s10  ;;  %p40_p2 = scmp.lt.s32.totalorder %s34_s10, %s34_s10 }
   0x8   :  { %p41_p3 = por %p40_p2, %p39_p1 }
   0x9   :  { %v10_v1 = vld [vmem:[#allocation3] sm:$0x1]  }
   0xa   :  { %v7_v2 = vld [vmem:[#allocation3] sm:$0x1]   ;;  %11 = vrot.lane.b32.xlu0 %v10_v1, %s58_s0  ;;  %p42_p4 = pnand %p41_p3, %p35_p0 }
   0xb   :  { %9 = vst.msk [vmem:[#allocation2] sm:$0x1] %vm8_vm0, %v7_v2  }
  0x7c   :  { %v12_v3 = vpop.permute.xlu0 %11  }
  0x7d   :  { %15 = vst.msk [vmem:[#allocation2 + $0x1] sm:$0x1] %vm8_vm0, %v12_v3  }
  0x84   :  { %v19_v4 = vld [vmem:[#allocation2] sm:$0x3] }
  0x85   :  { %21 = vst [vmem:[#allocation0] sm:$0x3] %v19_v4 }
  0x86   :  { %45 = shalt.err (!%p42_p4)
}
  0x87   :  { %s46_s13 = scalar_lea.hbm %s86_s1, 32 }
  0x88   :  { %p47_p5 = scmp.ne.s32.totalorder %s86_s1, %s46_s13  ;;  %p50_p6 = scmp.lt.u32.totalorder %s46_s13, %s86_s1 }
  0x8a   :  { %p52_p7 = pnand %p50_p6, %p47_p5 }
  0x8c   :  { %55 = shalt.err (!%p52_p7)
}
  0x8d   :  { %29 = dma.vmem_to_hbm [thread:$0]  %s27_s9, 32, %s86_s1, [#allocation1]  }
  0x8e   :  { %56 = dma.done.wait [#allocation1], 32  }
  0x8f   :  { %57 = vsyncadd [#allocation1], 4294967264 }
  0x90   :  { %31 = vsyncpa [#allocation1], 1 }

// kernel: full_basic_model.1
= control target key start
LH: loop header
LB: loop body
LE: loop exit
PB: predicated region body
PF: predicated region fallthrough
CT: control target
= control target key end

     0   :  { %s501_s0 = inlined_call_operand.vmem [shape: bf16[16,35], index: 0, kind: input, shape index: {}]   ;;  %s502_s1 = inlined_call_operand.vmem [shape: bf16[35,32], index: 1, kind: input, shape index: {}]   ;;  %s503_s2 = inlined_call_operand.vmem [shape: f32[1,32], index: 2, kind: input, shape index: {}]   ;;  %s504_s3 = inlined_call_operand.vmem [shape: bf16[32,32], index: 3, kind: input, shape index: {}]   ;;  %s505_s4 = inlined_call_operand.vmem [shape: f32[1,32], index: 4, kind: input, shape index: {}]   ;;  %s506_s5 = inlined_call_operand.vmem [shape: bf16[32,1], index: 5, kind: input, shape index: {}]   ;;  %s507_s6 = inlined_call_operand.<no memory space> [shape: f32[1,1], index: 6, kind: input, shape index: {}]   ;;  %s508_s7 = inlined_call_operand.vmem [shape: f32[2], index: 7, kind: input, shape index: {}]   ;;  %s509_s8 = inlined_call_operand.vmem [shape: f32[16,2], index: 8, kind: output, shape index: {}]  }
   0x1   :  { %v13_v0 = vstv %s507_s6 }
   0x2   :  { %14 = vst [vmem:[#allocation2] sm:$0x1] %v13_v0 }
   0x3   :  { %15 = vsyncpa [#allocation4], 0  ;;  %s36_s9 = sshll.u32 %s508_s7, 4  ;;  %s37_s9 = int_to_ptr.vmem [resolvable:$true] %s36_s9 }
   0x4   :  { %s388_s10 = scalar_lea.vmem %s37_s9, 16  ;;  %p393_p1 = scmp.lt.s32.totalorder %s37_s9, %s37_s9 }
   0x5   :  { %p389_p0 = scmp.ne.s32.totalorder %s37_s9, %s388_s10  ;;  %p394_p2 = scmp.lt.s32.totalorder %s388_s10, %s388_s10 }
   0x7   :  { %p395_p3 = por %p394_p2, %p393_p1 }
   0x9   :  { %p396_p4 = pnand %p395_p3, %p389_p0 }
   0xb   :  { %399 = shalt.err (!%p396_p4)
}
   0xc   :  { %s402_s11 = smov [#allocation3]  }
   0xd   :  { %39 = dma.vmem_to_smem %s37_s9, 16, %s402_s11, [#allocation4]  }
   0xe   :  { %400 = dma.done.wait [#allocation4], 16  }
   0xf   :  { %401 = vsyncadd [#allocation4], 4294967280 }
  0x10   :  { %43 = sfence }
  0x11   :  { %v379_v1 = vld [vmem:[%s502_s1] sm:$0xff]   ;;  %v403_v2 = vmov 0.0   ;;  %v380_v3 = vld [vmem:[%s502_s1 + $0x8] sm:$0xff]   ;;  %vm83_vm0 = vcmask 1040384   ;;  %vm84_vm1 = vcmask 1041408   ;;  %v404_v5 = vmov 65535  }
  0x12   :  { %346 = vmatprep.subr.bf16.mxu0 %v403_v2  ;;  %356 = vmatprep.subr.bf16.mxu1 %v403_v2  ;;  %v381_v4 = vld [vmem:[%s502_s1 + $0x10] ss:$0 sps:$4 sm:$0x33]   ;;  %v85_v6 = vsel %vm83_vm0, 4294967295, %v404_v5  ;;  %vm405_vm2 = vmmov 0   ;;  %v45_v8 = vld [vmem:[%s501_s0] sm:$0xff]  }
  0x13   :  { %347 = vmatpush3.bf16.msra.mxu0 %v379_v1  ;;  %352 = vmatprep.mubr.msk.bf16.mxu0 %vm405_vm2, %v403_v2  ;;  %v86_v7 = vsel %vm84_vm1, %v85_v6, 0  ;;  %vm79_vm3 = vcmask 285696   ;;  %v383_v10 = vld [vmem:[%s504_s3] sm:$0xff]   ;;  %v384_v11 = vld [vmem:[%s504_s3 + $0x8] sm:$0xff]   ;;  %vm157_vm4 = vcmask 261120   ;;  %s274_s24 = sld [smem:[#allocation3]]  ;;  %v272_v24 = vunpack.c.l.bf16 %v45_v8 }
  0x14   :  { %348 = vmatprep.subr.bf16.mxu0 %v403_v2  ;;  %360 = vmatprep.mubr.msk.bf16.mxu1 %vm405_vm2, %v403_v2  ;;  %v88_v9 = vand.u32 %v381_v4, %v86_v7  ;;  %v321_v12 = vld [vmem:[%s503_s2] ss:$0 sm:$0xff]  ;;  %v386_v23 = vld [vmem:[%s506_s5 + $0x8] sm:$0xff]   ;;  %s335_s25 = sld [smem:[#allocation3 + $0x1]]  ;;  %v273_v25 = vunpack.c.h.bf16 %v45_v8  ;;  %s406_s26 = smov 127   ;;  %vm310_vm5 = vcmask 7168  }
  0x15   :  { %357 = vmatpush3.bf16.msra.mxu1 %v383_v10  ;;  %v385_v22 = vld [vmem:[%s506_s5] sm:$0xff]   ;;  %s407_s27 = smov 126   ;;  %s408_s5 = smov 1   ;;  %vm313_vm6 = vcmask 15360  }
  0x16   :  { %358 = vmatprep.subr.bf16.mxu1 %v403_v2  ;;  %v327_v32 = vld [vmem:[%s505_s4] ss:$0 sm:$0xff] }
  0x17   :  { %349 = vmatpush3.bf16.msra.mxu0 %v380_v3  ;;  %v331_v42 = vld [vmem:[#allocation2] ss:$0 sm:$0xff] }
  0x18   :  { %350 = vmatprep.subr.bf16.mxu0 %v403_v2 }
  0x19   :  { %359 = vmatpush3.bf16.msra.mxu1 %v384_v11  ;;  %v275_v26 = vstv %s274_s24 }
  0x1a   :  { %364 = vmatprep.subr.bf16.mxu1 %v403_v2  ;;  %v276_v27 = vmul.f32 %v275_v26, %v272_v24  ;;  %v289_v28 = vstv %s335_s25  ;;  %v277_v30 = vmul.f32 %v275_v26, %v273_v25 }
  0x1b   :  { %351 = vmatpush3.bf16.msra.mxu0 %v88_v9  ;;  %v290_v29 = vmul.f32 %v289_v28, %v272_v24  ;;  %v291_v31 = vmul.f32 %v289_v28, %v273_v25 }
  0x1c   :  { %280 = vrot.lane.b32.xlu0 %v276_v27, %s406_s26 }
  0x1d   :  { %294 = vrot.lane.b32.xlu1 %v290_v29, %s407_s27 }
  0x1e   :  { %353 = vmatmul.mubr.msk.bf16.vlgmr.msra.gmra.mrb[0].mxu0 %vm79_vm3, %v45_v8 }
  0x20   :  { %282 = vrot.lane.b32.xlu0 %v277_v30, %s406_s26 }
  0x21   :  { %296 = vrot.lane.b32.xlu1 %v291_v31, %s407_s27 }
  0x8e   :  { %v281_v49 = vpop.permute.xlu0 %280 }
  0x8f   :  { %v295_v50 = vpop.permute.xlu1 %294 }
  0x92   :  { %v283_v51 = vpop.permute.xlu0 %282 }
  0x93   :  { %v297_v54 = vpop.permute.xlu1 %296 }
  0xf1   :  { %v124_v13 = vpop.f32.mrb[0].mxu0 }
  0xf2   :  { %v125_v14 = vadd.f32 %v321_v12, %v124_v13  ;;  %v354_v15 = vpop.f32.mrb[1].mxu0 }
  0xf3   :  { %v127_v16 = vpop.f32.mrb[2].mxu0 }
  0xf4   :  { %v128_v17 = vadd.f32 %v321_v12, %v127_v16  ;;  %v355_v18 = vpop.f32.mrb[3].mxu0  ;;  %v131_v19 = vmax.f32 %v125_v14, 0.0 }
  0xf6   :  { %v132_v20 = vmax.f32 %v128_v17, 0.0 }
  0xf8   :  { %v133_v21 = vpack.c.bf16 %v132_v20, %v131_v19 }
  0xfa   :  { %361 = vmatmul.mubr.msk.bf16.vlgmr.msra.gmra.mrb[0].mxu1 %vm157_vm4, %v133_v21 }
  0xfb   :  { %368 = vmatprep.mubr.msk.bf16.mxu1 %vm405_vm2, %v403_v2  ;;  %365 = vmatpush3.bf16.msra.mxu1 %v385_v22 }
  0xfc   :  { %366 = vmatprep.subr.bf16.mxu1 %v403_v2 }
  0xff   :  { %367 = vmatpush3.bf16.msra.mxu1 %v386_v23 }
 0x1cd   :  { %v195_v33 = vpop.f32.mrb[0].mxu1 }
 0x1ce   :  { %v196_v34 = vadd.f32 %v327_v32, %v195_v33  ;;  %v362_v35 = vpop.f32.mrb[1].mxu1 }
 0x1cf   :  { %v198_v36 = vpop.f32.mrb[2].mxu1 }
 0x1d0   :  { %v199_v37 = vadd.f32 %v327_v32, %v198_v36  ;;  %v363_v38 = vpop.f32.mrb[3].mxu1  ;;  %v202_v39 = vmax.f32 %v196_v34, 0.0 }
 0x1d2   :  { %v203_v40 = vmax.f32 %v199_v37, 0.0 }
 0x1d4   :  { %v204_v41 = vpack.c.bf16 %v203_v40, %v202_v39 }
 0x1d6   :  { %369 = vmatmul.mubr.msk.bf16.vlgmr.msra.gmra.mrb[4].mxu1 %vm157_vm4, %v204_v41 }
 0x2a9   :  { %v265_v43 = vpop.f32.mrb[4].mxu1 }
 0x2aa   :  { %v266_v44 = vadd.f32 %v331_v42, %v265_v43  ;;  %v370_v45 = vpop.f32.mrb[5].mxu1 }
 0x2ab   :  { %v268_v46 = vpop.f32.mrb[6].mxu1 }
 0x2ac   :  { %v269_v47 = vadd.f32 %v331_v42, %v268_v46  ;;  %304 = vrot.lane.b32.xlu0 %v266_v44, %s408_s5  ;;  %v371_v48 = vpop.f32.mrb[7].mxu1  ;;  %v286_v52 = vadd.f32 %v281_v49, %v266_v44 }
 0x2ae   :  { %306 = vrot.lane.b32.xlu1 %v269_v47, %s408_s5  ;;  %v287_v53 = vadd.f32 %v283_v51, %v269_v47  ;;  %v300_v55 = vadd.f32 %v295_v50, %v286_v52 }
 0x2b0   :  { %v301_v57 = vadd.f32 %v297_v54, %v287_v53 }
 0x31e   :  { %v305_v56 = vpop.permute.xlu0 %304 }
 0x31f   :  { %v311_v58 = vsel %vm310_vm5, %v300_v55, %v305_v56 }
 0x320   :  { %314 = vst.msk [vmem:[%s509_s8] sm:$0xff] %vm313_vm6, %v311_v58  ;;  %v307_v59 = vpop.permute.xlu1 %306 }
 0x321   :  { %v312_v60 = vsel %vm310_vm5, %v301_v57, %v307_v59 }
 0x322   :  { %315 = vst.msk [vmem:[%s509_s8 + $0x8] sm:$0xff] %vm313_vm6, %v312_v60 }
 0x323   :  { %320 = vsyncpa [#allocation4], 1 }

</bundles_post_ra>
